<compile_context>
chip_gen: v7x
topology: tpu7x:2x2x1
jax: 0.10.0
libtpu: 0.0.40
codegen_flags: <defaults>
</compile_context>

<pallas_src>
import functools

import jax
import jax.numpy as jnp
from jax import lax
from jax.experimental import pallas as pl
from jax.experimental.pallas import tpu as pltpu

LANE = 128             # lane width
MAX_BLOCK_ROWS = 4096  # (4096, 128) f32 block = 2 MiB / input / buffer


def _num_tensorcores():
    """Best-effort TensorCore-per-chip count (1 on v5e/v6e, 2 on v7x)."""
    try:
        info = pltpu.get_tpu_info()
        for name in ("num_cores", "core_count", "num_tensorcores",
                     "tensorcore_count", "cores_per_chip", "num_cores_per_chip"):
            v = getattr(info, name, None)
            if isinstance(v, int) and v >= 1:
                return v
    except Exception:
        pass
    try:
        if "v7" in jax.devices()[0].device_kind.lower():
            return 2
    except Exception:
        pass
    return 1


def _focal_loss_kernel(pred_ref, gt_ref, out_ref, acc_loss_ref, acc_cnt_ref,
                       *, block_rows, acc_rows, steps, rows, needs_mask):
    c = pl.program_id(0)   # partial index (one per TensorCore on v7x)
    j = pl.program_id(1)   # reduction step

    @pl.when(j == 0)
    def _init():
        acc_loss_ref[...] = jnp.zeros_like(acc_loss_ref)
        acc_cnt_ref[...] = jnp.zeros_like(acc_cnt_ref)

    pred = pred_ref[...].astype(jnp.float32)
    gt = gt_ref[...].astype(jnp.float32)

    pos = gt == 1.0
    active = gt <= 1.0                     # pos | neg (disjoint, one compare)

    if needs_mask:
        # Rows past the real data (partial boundary block, or the clamped
        # phantom block of the last partial) are excluded from both the loss
        # and the count by folding validity into `active`.
        logical_block = c * steps + j
        row_ids = (logical_block * block_rows
                   + lax.broadcasted_iota(jnp.int32, (block_rows, LANE), 0))
        active = jnp.logical_and(active, row_ids < rows)

    one_minus_pred = 1.0 - pred
    one_minus_gt = 1.0 - gt
    neg_w = one_minus_gt * one_minus_gt
    neg_w = neg_w * neg_w                  # (1 - gt)^4

    # pos/neg masks are disjoint -> a single log() per element.
    log_arg = jnp.where(pos, pred, one_minus_pred)
    weight = jnp.where(pos, one_minus_pred * one_minus_pred,
                       pred * pred * neg_w)
    # contrib MUST stay a select: NaN/-inf from garbage boundary/phantom rows
    # is discarded here, never multiplied into the accumulator.
    contrib = jnp.where(active, jnp.log(log_arg) * weight, 0.0)
    cnt = active.astype(jnp.float32)

    # (block_rows, 128) -> (acc_rows, 128) via pure VPU vreg adds; the
    # cross-lane (XLU) reduction happens exactly once, in finalize.
    groups = block_rows // acc_rows
    acc_loss_ref[...] += contrib.reshape(groups, acc_rows, LANE).sum(axis=0)
    acc_cnt_ref[...] += cnt.reshape(groups, acc_rows, LANE).sum(axis=0)

    @pl.when(j == pl.num_programs(1) - 1)
    def _finalize():
        out_ref[0, 0] = jnp.sum(acc_loss_ref[...])   # sum(pos_loss)+sum(neg_loss)
        out_ref[0, 1] = jnp.sum(acc_cnt_ref[...])    # num_pos (per reference)


def _jnp_partial(pred, gt):
    """Plain-jnp partial sums for a tiny (<128 element) tail."""
    pred = pred.astype(jnp.float32)
    gt = gt.astype(jnp.float32)
    pos = gt == 1.0
    active = gt <= 1.0
    neg_w = jnp.square(jnp.square(1.0 - gt))
    log_arg = jnp.where(pos, pred, 1.0 - pred)
    weight = jnp.where(pos, jnp.square(1.0 - pred), jnp.square(pred) * neg_w)
    loss = jnp.where(active, jnp.log(log_arg) * weight, 0.0)
    return loss.sum(), active.astype(jnp.float32).sum()


def focal_loss(pred, gt, *, partials=None):
    """Pallas TPU implementation of FocalLoss.forward(pred, gt) -> scalar."""
    pred_f = pred.reshape(-1)
    gt_f = gt.reshape(-1)
    n = pred_f.shape[0]
    rows = n // LANE
    tail = n - rows * LANE

    loss_sum = jnp.float32(0.0)
    cnt_sum = jnp.float32(0.0)

    if tail:
        # TODO(synk): non-lane-aligned inputs (never these heatmaps) pay one
        # extra prefix copy; the <128-element remainder is done in plain jnp.
        t_loss, t_cnt = _jnp_partial(pred_f[rows * LANE:], gt_f[rows * LANE:])
        loss_sum += t_loss
        cnt_sum += t_cnt
        if rows == 0:
            return -loss_sum / cnt_sum
        pred2 = pred_f[: rows * LANE].reshape(rows, LANE)
        gt2 = gt_f[: rows * LANE].reshape(rows, LANE)
    else:
        pred2 = pred_f.reshape(rows, LANE)   # contiguous reshape: no HBM pass
        gt2 = gt_f.reshape(rows, LANE)

    # Block sizing: sublane granularity depends on input packing (8 rows for
    # f32, 16 for bf16, 32 for int8); prefer 32-row granules so the (32,128)
    # accumulator divides the block. Tiny inputs use a single full-extent block.
    itemsize = min(jnp.dtype(pred2.dtype).itemsize, jnp.dtype(gt2.dtype).itemsize)
    sub = max(8, 32 // max(itemsize, 1))
    if rows >= 32:
        granule = 32
    elif rows >= sub:
        granule = sub
    else:
        granule = 0
    if granule:
        block_rows = min(MAX_BLOCK_ROWS, (rows // granule) * granule)
        acc_rows = min(32, block_rows)
    else:
        block_rows = rows
        acc_rows = rows
    num_blocks = pl.cdiv(rows, block_rows)

    # Split the reduction into per-TensorCore partials only when the hardware
    # actually has multiple cores (v7x); single-TC chips run one partial and
    # avoid the phantom-block masking overhead entirely.
    num_cores = _num_tensorcores()
    if partials is None:
        partials = 2 if (num_cores >= 2 and num_blocks >= 2) else 1
    partials = max(1, min(partials, num_blocks))
    steps = pl.cdiv(num_blocks, partials)
    needs_mask = partials * steps * block_rows > rows

    if partials >= 2 and num_cores >= 2:
        dim_sem = (getattr(pltpu, "CORE_PARALLEL", "parallel"), "arbitrary")
    else:
        dim_sem = ("arbitrary", "arbitrary")

    kernel = functools.partial(
        _focal_loss_kernel, block_rows=block_rows, acc_rows=acc_rows,
        steps=steps, rows=rows, needs_mask=needs_mask)

    def in_map(c, j):
        # Clamp the phantom block of the last partial back in range; its rows
        # are masked out inside the kernel so nothing is double counted.
        return (jnp.minimum(c * steps + j, num_blocks - 1), 0)

    partial_sums = pl.pallas_call(
        kernel,
        out_shape=jax.ShapeDtypeStruct((partials, 2), jnp.float32),
        grid_spec=pltpu.PrefetchScalarGridSpec(
            num_scalar_prefetch=0,
            grid=(partials, steps),
            in_specs=[
                pl.BlockSpec((block_rows, LANE), in_map),
                pl.BlockSpec((block_rows, LANE), in_map),
            ],
            out_specs=pl.BlockSpec((1, 2), lambda c, j: (c, 0),
                                   memory_space=pltpu.SMEM),
            scratch_shapes=[
                pltpu.VMEM((acc_rows, LANE), jnp.float32),   # loss accumulator
                pltpu.VMEM((acc_rows, LANE), jnp.float32),   # count accumulator
            ],
        ),
        compiler_params=pltpu.CompilerParams(dimension_semantics=dim_sem),
    )(pred2, gt2)

    loss_sum += jnp.sum(partial_sums[:, 0])
    num_pos = cnt_sum + jnp.sum(partial_sums[:, 1])
    # Exactly the reference semantics: loss = -(pos_loss + neg_loss) / num_pos
    # (num_pos = #pos + #neg, no clamp, matching the PyTorch module).
    return -loss_sum / num_pos


def focal_loss_ref(pred, gt):
    """Pure-JAX reference matching the PyTorch module exactly."""
    pred = pred.astype(jnp.float32)
    gt = gt.astype(jnp.float32)
    pos_inds = (gt == 1.0).astype(jnp.float32)
    neg_inds = (gt < 1.0).astype(jnp.float32)
    neg_weights = jnp.power(1.0 - gt, 4)
    pos_loss = jnp.log(pred) * jnp.power(1.0 - pred, 2) * pos_inds
    neg_loss = jnp.log(1.0 - pred) * jnp.power(pred, 2) * neg_weights * neg_inds
    num_pos = pos_inds.sum() + neg_inds.sum()
    return -(pos_loss.sum() + neg_loss.sum()) / num_pos


if __name__ == "__main__":
    key = jax.random.PRNGKey(0)
    k1, k2, k3 = jax.random.split(key, 3)

    # Case 1: f32 NCHW heatmaps like the PyTorch module (lane aligned,
    # single block, no masking).
    B, C, H, W = 2, 4, 16, 16
    pred = jax.nn.sigmoid(jax.random.normal(k1, (B, C, H, W), jnp.float32))
    gt = jax.random.uniform(k2, (B, C, H, W), jnp.float32, 0.0, 0.999)
    gt = jnp.where(jax.random.uniform(k3, (B, C, H, W)) < 0.02, 1.0, gt)
    loss = jax.block_until_ready(focal_loss(pred, gt))
    ref = jax.block_until_ready(focal_loss_ref(pred, gt))
    assert jnp.isfinite(loss), f"non-finite loss: {loss}"
    assert jnp.allclose(loss, ref, rtol=1e-5, atol=1e-5), (loss, ref)

    # Case 2: f32, multi-block grid with a partial boundary block; the
    # two-partial reduction path is forced on to exercise masking + combine.
    k4, k5, k6 = jax.random.split(jax.random.PRNGKey(1), 3)
    pred2 = jax.nn.sigmoid(jax.random.normal(k4, (2, 3, 16, 16), jnp.float32))
    gt2 = jax.random.uniform(k5, (2, 3, 16, 16), jnp.float32, 0.0, 0.999)
    gt2 = jnp.where(jax.random.uniform(k6, (2, 3, 16, 16)) < 0.02, 1.0, gt2)
    loss2 = jax.block_until_ready(focal_loss(pred2, gt2, partials=2))
    ref2 = jax.block_until_ready(focal_loss_ref(pred2, gt2))
    assert jnp.isfinite(loss2), f"non-finite loss: {loss2}"
    assert jnp.allclose(loss2, ref2, rtol=1e-5, atol=1e-5), (loss2, ref2)

    # Case 3: bf16 inputs passed straight through the BlockSpecs (half the
    # HBM traffic), exercising the wide (32,128) accumulator path.
    k7, k8, k9 = jax.random.split(jax.random.PRNGKey(2), 3)
    pred3 = jax.random.uniform(k7, (2, 4, 32, 16), jnp.float32,
                               0.05, 0.95).astype(jnp.bfloat16)
    gt3 = jax.random.uniform(k8, (2, 4, 32, 16), jnp.float32,
                             0.0, 0.99).astype(jnp.bfloat16)
    gt3 = jnp.where(jax.random.uniform(k9, (2, 4, 32, 16)) < 0.02,
                    1.0, gt3).astype(jnp.bfloat16)
    loss3 = jax.block_until_ready(focal_loss(pred3, gt3))
    ref3 = jax.block_until_ready(focal_loss_ref(pred3, gt3))
    assert jnp.isfinite(loss3), f"non-finite loss: {loss3}"
    assert jnp.allclose(loss3, ref3, rtol=1e-4, atol=1e-4), (loss3, ref3)

    print("KERNEL_OK")
</pallas_src>

<mosaic_0001>
module attributes {stable_mosaic.version = 11 : i64} {
  func.func @_focal_loss_kernel(%arg0: i32, %arg1: i32, %arg2: memref<16x128xf32, #tpu.memory_space<vmem>>, %arg3: memref<16x128xf32, #tpu.memory_space<vmem>>, %arg4: memref<1x2xf32, #tpu.memory_space<smem>>, %arg5: memref<16x128xf32, #tpu.memory_space<vmem>>, %arg6: memref<16x128xf32, #tpu.memory_space<vmem>>) attributes {dimension_semantics = [#tpu.dimension_semantics<arbitrary>, #tpu.dimension_semantics<arbitrary>], iteration_bounds = array<i64: 1, 1>, scalar_prefetch = 0 : i64, scratch_operands = 2 : i64, tpu.core_type = #tpu.core_type<tc>, window_params = [{transform_indices = @transform_0, window_bounds = array<i64: 16, 128>}, {transform_indices = @transform_1, window_bounds = array<i64: 16, 128>}, {transform_indices = @transform_2, window_bounds = array<i64: 1, 2>}]} {
    %c0_i32 = arith.constant 0 : i32
    %0 = arith.cmpi eq, %arg1, %c0_i32 : i32
    %1 = arith.extui %0 : i1 to i32
    %c0_i32_0 = arith.constant 0 : i32
    %2 = arith.cmpi ne, %1, %c0_i32_0 : i32
    scf.if %2 {
      %cst_20 = arith.constant 0.000000e+00 : f32
      %39 = vector.broadcast %cst_20 : f32 to vector<16x128xf32>
      %c0_21 = arith.constant 0 : index
      %c0_22 = arith.constant 0 : index
      %40 = vector.load %arg5[%c0_21, %c0_22] : memref<16x128xf32, #tpu.memory_space<vmem>>, vector<16x128xf32>
      tpu.vector_store %arg5[%c0_21, %c0_22], %39 {strides = array<i32>} : memref<16x128xf32, #tpu.memory_space<vmem>>, vector<16x128xf32>,
      %cst_23 = arith.constant 0.000000e+00 : f32
      %41 = vector.broadcast %cst_23 : f32 to vector<16x128xf32>
      %c0_24 = arith.constant 0 : index
      %c0_25 = arith.constant 0 : index
      %42 = vector.load %arg6[%c0_24, %c0_25] : memref<16x128xf32, #tpu.memory_space<vmem>>, vector<16x128xf32>
      tpu.vector_store %arg6[%c0_24, %c0_25], %41 {strides = array<i32>} : memref<16x128xf32, #tpu.memory_space<vmem>>, vector<16x128xf32>,
    } else {
    }
    %c0 = arith.constant 0 : index
    %c0_1 = arith.constant 0 : index
    %3 = vector.load %arg2[%c0, %c0_1] : memref<16x128xf32, #tpu.memory_space<vmem>>, vector<16x128xf32>
    %c0_2 = arith.constant 0 : index
    %c0_3 = arith.constant 0 : index
    %4 = vector.load %arg3[%c0_2, %c0_3] : memref<16x128xf32, #tpu.memory_space<vmem>>, vector<16x128xf32>
    %cst = arith.constant 1.000000e+00 : f32
    %5 = vector.broadcast %cst : f32 to vector<16x128xf32>
    %6 = arith.cmpf oeq, %4, %5 : vector<16x128xf32>
    %cst_4 = arith.constant 1.000000e+00 : f32
    %7 = vector.broadcast %cst_4 : f32 to vector<16x128xf32>
    %8 = arith.cmpf ole, %4, %7 : vector<16x128xf32>
    %cst_5 = arith.constant 1.000000e+00 : f32
    %9 = vector.broadcast %cst_5 : f32 to vector<16x128xf32>
    %10 = arith.subf %9, %3 : vector<16x128xf32>
    %cst_6 = arith.constant 1.000000e+00 : f32
    %11 = vector.broadcast %cst_6 : f32 to vector<16x128xf32>
    %12 = arith.subf %11, %4 : vector<16x128xf32>
    %13 = arith.mulf %12, %12 : vector<16x128xf32>
    %14 = arith.mulf %13, %13 : vector<16x128xf32>
    %15 = arith.select %6, %3, %10 : vector<16x128xi1>, vector<16x128xf32>
    %16 = arith.mulf %10, %10 : vector<16x128xf32>
    %17 = arith.mulf %3, %3 : vector<16x128xf32>
    %18 = arith.mulf %17, %14 : vector<16x128xf32>
    %19 = arith.select %6, %16, %18 : vector<16x128xi1>, vector<16x128xf32>
    %20 = math.log %15 : vector<16x128xf32>
    %21 = arith.mulf %20, %19 : vector<16x128xf32>
    %cst_7 = arith.constant 0.000000e+00 : f32
    %22 = vector.broadcast %cst_7 : f32 to vector<16x128xf32>
    %23 = arith.select %8, %21, %22 : vector<16x128xi1>, vector<16x128xf32>
    %24 = arith.extui %8 : vector<16x128xi1> to vector<16x128xi32>
    %25 = arith.sitofp %24 : vector<16x128xi32> to vector<16x128xf32>
    %c0_8 = arith.constant 0 : index
    %c0_9 = arith.constant 0 : index
    %26 = vector.load %arg5[%c0_8, %c0_9] : memref<16x128xf32, #tpu.memory_space<vmem>>, vector<16x128xf32>
    %27 = vector.shape_cast %23 : vector<16x128xf32> to vector<1x16x128xf32>
    %cst_10 = arith.constant dense<0.000000e+00> : vector<16x128xf32>
    %28 = vector.multi_reduction <add>, %27, %cst_10 [0] : vector<1x16x128xf32> to vector<16x128xf32>
    %29 = arith.addf %26, %28 : vector<16x128xf32>
    %c0_11 = arith.constant 0 : index
    %c0_12 = arith.constant 0 : index
    %30 = vector.load %arg5[%c0_11, %c0_12] : memref<16x128xf32, #tpu.memory_space<vmem>>, vector<16x128xf32>
    tpu.vector_store %arg5[%c0_11, %c0_12], %29 {strides = array<i32>} : memref<16x128xf32, #tpu.memory_space<vmem>>, vector<16x128xf32>,
    %c0_13 = arith.constant 0 : index
    %c0_14 = arith.constant 0 : index
    %31 = vector.load %arg6[%c0_13, %c0_14] : memref<16x128xf32, #tpu.memory_space<vmem>>, vector<16x128xf32>
    %32 = vector.shape_cast %25 : vector<16x128xf32> to vector<1x16x128xf32>
    %cst_15 = arith.constant dense<0.000000e+00> : vector<16x128xf32>
    %33 = vector.multi_reduction <add>, %32, %cst_15 [0] : vector<1x16x128xf32> to vector<16x128xf32>
    %34 = arith.addf %31, %33 : vector<16x128xf32>
    %c0_16 = arith.constant 0 : index
    %c0_17 = arith.constant 0 : index
    %35 = vector.load %arg6[%c0_16, %c0_17] : memref<16x128xf32, #tpu.memory_space<vmem>>, vector<16x128xf32>
    tpu.vector_store %arg6[%c0_16, %c0_17], %34 {strides = array<i32>} : memref<16x128xf32, #tpu.memory_space<vmem>>, vector<16x128xf32>,
    %c0_i32_18 = arith.constant 0 : i32
    %36 = arith.cmpi eq, %arg1, %c0_i32_18 : i32
    %37 = arith.extui %36 : i1 to i32
    %c0_i32_19 = arith.constant 0 : i32
    %38 = arith.cmpi ne, %37, %c0_i32_19 : i32
    scf.if %38 {
      %c0_20 = arith.constant 0 : index
      %c0_21 = arith.constant 0 : index
      %39 = vector.load %arg5[%c0_20, %c0_21] : memref<16x128xf32, #tpu.memory_space<vmem>>, vector<16x128xf32>
      %40 = vector.shape_cast %39 : vector<16x128xf32> to vector<1x16x128xf32>
      %cst_22 = arith.constant dense<0.000000e+00> : vector<1xf32>
      %41 = vector.multi_reduction <add>, %40, %cst_22 [1, 2] : vector<1x16x128xf32> to vector<1xf32>
      %42 = vector.shape_cast %41 : vector<1xf32> to vector<1x1x1xf32>
      %43 = vector.extract %42[0, 0, 0] : f32 from vector<1x1x1xf32>
      %c0_23 = arith.constant 0 : index
      %c0_24 = arith.constant 0 : index
      %44 = memref.load %arg4[%c0_23, %c0_24] : memref<1x2xf32, #tpu.memory_space<smem>>
      memref.store %43, %arg4[%c0_23, %c0_24] : memref<1x2xf32, #tpu.memory_space<smem>>
      %c0_25 = arith.constant 0 : index
      %c0_26 = arith.constant 0 : index
      %45 = vector.load %arg6[%c0_25, %c0_26] : memref<16x128xf32, #tpu.memory_space<vmem>>, vector<16x128xf32>
      %46 = vector.shape_cast %45 : vector<16x128xf32> to vector<1x16x128xf32>
      %cst_27 = arith.constant dense<0.000000e+00> : vector<1xf32>
      %47 = vector.multi_reduction <add>, %46, %cst_27 [1, 2] : vector<1x16x128xf32> to vector<1xf32>
      %48 = vector.shape_cast %47 : vector<1xf32> to vector<1x1x1xf32>
      %49 = vector.extract %48[0, 0, 0] : f32 from vector<1x1x1xf32>
      %c0_28 = arith.constant 0 : index
      %c1 = arith.constant 1 : index
      %50 = memref.load %arg4[%c0_28, %c1] : memref<1x2xf32, #tpu.memory_space<smem>>
      memref.store %49, %arg4[%c0_28, %c1] : memref<1x2xf32, #tpu.memory_space<smem>>
    } else {
    }
    return
  }
  func.func @transform_0(%arg0: i32, %arg1: i32) -> (i32, i32) {
    %c1_i32 = arith.constant 1 : i32
    %0 = arith.muli %arg0, %c1_i32 : i32
    %1 = arith.addi %0, %arg1 : i32
    %c0_i32 = arith.constant 0 : i32
    %2 = arith.minsi %1, %c0_i32 : i32
    %c0_i32_0 = arith.constant 0 : i32
    %c0_i32_1 = arith.constant 0 : i32
    return %2, %c0_i32_0 : i32, i32
  }
  func.func @transform_1(%arg0: i32, %arg1: i32) -> (i32, i32) {
    %c1_i32 = arith.constant 1 : i32
    %0 = arith.muli %arg0, %c1_i32 : i32
    %1 = arith.addi %0, %arg1 : i32
    %c0_i32 = arith.constant 0 : i32
    %2 = arith.minsi %1, %c0_i32 : i32
    %c0_i32_0 = arith.constant 0 : i32
    %c0_i32_1 = arith.constant 0 : i32
    return %2, %c0_i32_0 : i32, i32
  }
  func.func @transform_2(%arg0: i32, %arg1: i32) -> (i32, i32) {
    %c0_i32 = arith.constant 0 : i32
    %c0_i32_0 = arith.constant 0 : i32
    return %arg0, %c0_i32 : i32, i32
  }
}

</mosaic_0001>

<bundles_post_ra>
// kernel: tpu_custom_call.1
= control target key start
LH: loop header
LB: loop body
LE: loop exit
PB: predicated region body
PF: predicated region fallthrough
CT: control target
= control target key end

     0   :  { %7 = vsyncpa [#allocation5], 0  ;;  %s309_s0 = inlined_call_operand.hbm [shape: f32[16,128], index: 0, kind: input, shape index: {}]   ;;  %s310_s1 = inlined_call_operand.hbm [shape: f32[16,128], index: 1, kind: input, shape index: {}]   ;;  %s311_s2 = inlined_call_operand.hbm [shape: f32[1,2], index: 2, kind: output, shape index: {}]  }
   0x1   :  { %8 = vsyncpa [#allocation8], 0 }
   0x2   :  { %9 = vsyncpa [#allocation6], 0  ;;  %s248_s9 = smov [#allocation4]   ;;  %s188_s13 = scalar_lea.hbm %s309_s0, 256 }
   0x3   :  { %s21_s10 = sshll.u32 %s248_s9, 4  ;;  %p189_p0 = scmp.ne.s32.totalorder %s309_s0, %s188_s13  ;;  %s22_s10 = int_to_ptr.vmem [resolvable:$true] %s21_s10 }
   0x4   :  { %p192_p1 = scmp.lt.u32.totalorder %s188_s13, %s309_s0 }
   0x6   :  { %p194_p2 = pnand %p192_p1, %p189_p0 }
   0x8   :  { %197 = shalt.err (!%p194_p2)
}
   0x9   :  { %s198_s18 = scalar_lea.vmem %s22_s10, 256  ;;  %p203_p4 = scmp.lt.s32.totalorder %s22_s10, %s22_s10 }
   0xa   :  { %p199_p3 = scmp.ne.s32.totalorder %s22_s10, %s198_s18  ;;  %p204_p5 = scmp.lt.s32.totalorder %s198_s18, %s198_s18 }
   0xc   :  { %p205_p6 = por %p204_p5, %p203_p4 }
   0xe   :  { %p206_p7 = pnand %p205_p6, %p199_p3 }
  0x10   :  { %209 = shalt.err (!%p206_p7)
}
  0x11   :  { %s249_s19 = smov 128   ;;  %s250_s20 = smov 8  }
  0x12   :  { %27 = dma.hbm_to_vmem [thread:$0]  %s309_s0, 256, %s22_s10, [#allocation5], %s249_s19, %s249_s19, %s250_s20  }
  0x13   :  { %s251_s23 = smov [#allocation7]   ;;  %s210_s27 = scalar_lea.hbm %s310_s1, 256 }
  0x14   :  { %s39_s24 = sshll.u32 %s251_s23, 4  ;;  %p211_p8 = scmp.ne.s32.totalorder %s310_s1, %s210_s27  ;;  %s40_s24 = int_to_ptr.vmem [resolvable:$true] %s39_s24 }
  0x15   :  { %p214_p9 = scmp.lt.u32.totalorder %s210_s27, %s310_s1 }
  0x17   :  { %p216_p10 = pnand %p214_p9, %p211_p8 }
  0x19   :  { %219 = shalt.err (!%p216_p10)
}
  0x1a   :  { %s220_s4 = scalar_lea.vmem %s40_s24, 256  ;;  %p225_p12 = scmp.lt.s32.totalorder %s40_s24, %s40_s24 }
  0x1b   :  { %p221_p11 = scmp.ne.s32.totalorder %s40_s24, %s220_s4  ;;  %p226_p13 = scmp.lt.s32.totalorder %s220_s4, %s220_s4 }
  0x1d   :  { %p227_p0 = por %p226_p13, %p225_p12 }
  0x1f   :  { %p228_p1 = pnand %p227_p0, %p221_p11 }
  0x21   :  { %231 = shalt.err (!%p228_p1)
}
  0x22   :  { %45 = dma.hbm_to_vmem [thread:$0]  %s310_s1, 256, %s40_s24, [#allocation8], %s249_s19, %s249_s19, %s250_s20  }
  0x23   :  { %242 = dma.done.wait [#allocation5], 256  }
  0x24   :  { %243 = vsyncadd [#allocation5], 4294967040 }
  0x25   :  { %244 = dma.done.wait [#allocation8], 256  }
  0x26   :  { %245 = vsyncadd [#allocation8], 4294967040  ;;  %v68_v0 = vld [vmem:[#allocation4] sm:$0xff]  ;;  %v69_v1 = vld [vmem:[#allocation4 + $0x8] sm:$0xff]  ;;  %v252_v30 = vmov 0.0   ;;  %s232_s9 = scalar_lea.hbm %s311_s2, 16 }
  0x27   :  { %v70_v2 = vld [vmem:[#allocation7] sm:$0xff]  ;;  %v71_v3 = vld [vmem:[#allocation7 + $0x8] sm:$0xff]  ;;  %v76_v4 = vsub.f32 1.0, %v68_v0  ;;  %v77_v5 = vsub.f32 1.0, %v69_v1  ;;  %v88_v13 = vmul.f32 %v68_v0, %v68_v0  ;;  %v89_v15 = vmul.f32 %v69_v1, %v69_v1  ;;  %p233_p2 = scmp.ne.s32.totalorder %s311_s2, %s232_s9  ;;  %p236_p3 = scmp.lt.u32.totalorder %s232_s9, %s311_s2 }
  0x28   :  { %vm72_vm0 = vcmp.eq.f32.partialorder %v70_v2, 1.0  ;;  %vm73_vm1 = vcmp.eq.f32.partialorder %v71_v3, 1.0  ;;  %v78_v6 = vsub.f32 1.0, %v70_v2  ;;  %v79_v7 = vsub.f32 1.0, %v71_v3 }
  0x29   :  { %v84_v8 = vsel %vm72_vm0, %v68_v0, %v76_v4  ;;  %v85_v9 = vsel %vm73_vm1, %v69_v1, %v77_v5  ;;  %v86_v16 = vmul.f32 %v76_v4, %v76_v4  ;;  %v87_v18 = vmul.f32 %v77_v5, %v77_v5  ;;  %p238_p4 = pnand %p236_p3, %p233_p2 }
  0x2a   :  { %v80_v10 = vmul.f32 %v78_v6, %v78_v6  ;;  %v81_v11 = vmul.f32 %v79_v7, %v79_v7  ;;  %184 = vlog2.f32 %v84_v8  ;;  %vm74_vm2 = vcmp.le.f32.partialorder %v70_v2, 1.0 }
  0x2b   :  { %186 = vlog2.f32 %v85_v9  ;;  %vm75_vm3 = vcmp.le.f32.partialorder %v71_v3, 1.0  ;;  %v172_v31 = vsel %vm74_vm2, 1.0, %v252_v30 }
  0x2c   :  { %v82_v12 = vmul.f32 %v80_v10, %v80_v10  ;;  %v83_v14 = vmul.f32 %v81_v11, %v81_v11  ;;  %v173_v32 = vsel %vm75_vm3, 1.0, %v252_v30 }
  0x2d   :  { %v141_v34 = vadd.f32 %v173_v32, %v172_v31 }
  0x2e   :  { %v90_v17 = vmul.f32 %v88_v13, %v82_v12  ;;  %v91_v19 = vmul.f32 %v89_v15, %v83_v14 }
  0x30   :  { %v92_v21 = vsel %vm72_vm0, %v86_v16, %v90_v17  ;;  %v93_v23 = vsel %vm73_vm1, %v87_v18, %v91_v19 }
  0x34   :  { %v185_v20 = vpop.eup %184 }
  0x35   :  { %v187_v22 = vpop.eup %186  ;;  %v95_v24 = vmul.f32 0.6931472, %v185_v20 }
  0x36   :  { %v97_v25 = vmul.f32 0.6931472, %v187_v22 }
  0x37   :  { %v98_v26 = vmul.f32 %v95_v24, %v92_v21 }
  0x38   :  { %v99_v27 = vmul.f32 %v97_v25, %v93_v23 }
  0x39   :  { %v100_v28 = vsel %vm74_vm2, %v98_v26, 0.0 }
  0x3a   :  { %v101_v29 = vsel %vm75_vm3, %v99_v27, 0.0 }
  0x3b   :  { %v127_v33 = vadd.f32 %v101_v29, %v100_v28 }
  0x3d   :  { %128 = vadd.xlane.f32.xlu0 %v127_v33 }
  0x41   :  { %142 = vadd.xlane.f32.xlu0 %v141_v34 }
  0xca   :  { %v129_v35 = vpop.xlane.xlu0 %128 }
  0xcb   :  { %v130_v36 = vrot.slane %v129_v35, 4 }
  0xcd   :  { %v131_v37 = vadd.f32 %v130_v36, %v129_v35 }
  0xce   :  { %v143_v38 = vpop.xlane.xlu0 %142 }
  0xcf   :  { %v132_v39 = vrot.slane %v131_v37, 2  ;;  %v144_v40 = vrot.slane %v143_v38, 4 }
  0xd1   :  { %v145_v41 = vadd.f32 %v144_v40, %v143_v38  ;;  %v133_v42 = vadd.f32 %v132_v39, %v131_v37 }
  0xd3   :  { %v146_v43 = vrot.slane %v145_v41, 2  ;;  %v134_v44 = vrot.slane %v133_v42, 1 }
  0xd5   :  { %v147_v45 = vadd.f32 %v146_v43, %v145_v41  ;;  %v135_v46 = vadd.f32 %v134_v44, %v133_v42 }
  0xd7   :  { %174 = vpush %v135_v46  ;;  %v148_v47 = vrot.slane %v147_v45, 1 }
  0xd9   :  { %v149_v48 = vadd.f32 %v148_v47, %v147_v45 }
  0xdb   :  { %176 = vpush %v149_v48 }
 0x108   :  { %s175_s1 = spop %174 }
 0x109   :  { %138 = sst [smem:[#allocation9]] %s175_s1 }
 0x10c   :  { %s177_s6 = spop %176 }
 0x10d   :  { %152 = sst [smem:[#allocation9 + $0x1]] %s177_s6 }
 0x10e   :  { %241 = shalt.err (!%p238_p4)
}
 0x10f   :  { %s253_s14 = smov [#allocation9]  }
 0x110   :  { %160 = dma.smem_to_hbm %s253_s14, 16, %s311_s2, [#allocation6]  }
 0x111   :  { %246 = dma.done.wait [#allocation6], 16  }
 0x112   :  { %247 = vsyncadd [#allocation6], 4294967280 }
 0x113   :  { %164 = sfence }
 0x114   :  { %165 = vsyncpa [#allocation5], 1 }
 0x115   :  { %166 = vsyncpa [#allocation8], 1 }
 0x116   :  { %167 = vsyncpa [#allocation6], 1 }

</bundles_post_ra>
